<compile_context>
chip_gen: v6e
topology: v6e:2x2x1
jax: 0.10.0
libtpu: 0.0.40
codegen_flags: <defaults>
</compile_context>

<pallas_src>
import jax
import jax.numpy as jnp
from jax.experimental import pallas as pl
from jax.experimental.pallas import tpu as pltpu

NOUT = 128  # fused head width: [2 (head_mean) | 100 (head_var) | 26 zero pad]


def pendulum_head_kernel(frames_ref, cls_ref, w_ref, b_ref, out_ref, lhs_ref):
    # frames_ref: (TB, patches, n_frames, E)   patch-major frame tokens
    # cls_ref:    (TB, 1, E)                   CLS token
    # w_ref:      (E, NOUT)   fused [W_mean^T | W_var^T | 0]   (lane-dense 128)
    # b_ref:      (1, NOUT)   fused [b_mean   | b_var   | 0]
    # out_ref:    (TB, ROWS, NOUT) f32, ROWS = round_up(n_frames + 1, 8)
    # lhs_ref:    (TB, ROWS, E) f32 scratch (stacked matmul LHS)
    tb, patches, n_frames, e = frames_ref.shape
    rows = lhs_ref.shape[1]
    nout = out_ref.shape[2]

    # Per-frame patch mean: pure VPU adds over the leading patch axis
    # (no MXU matmul, no averaging-matrix input stream).
    frame_means = jnp.sum(frames_ref[...].astype(jnp.float32), axis=1) * (1.0 / patches)

    # Assemble [frame_means ; cls ; zero pad] into the 8-row-aligned LHS slab.
    lhs_ref[:, :n_frames, :] = frame_means
    lhs_ref[:, n_frames:n_frames + 1, :] = cls_ref[...].astype(jnp.float32)
    if rows > n_frames + 1:  # static (Python) guard on the pad tail
        lhs_ref[:, n_frames + 1:, :] = jnp.zeros(
            (tb, rows - n_frames - 1, e), jnp.float32)

    # One fused MXU pass for both linear heads; 128-wide lane-dense result.
    out2d = jnp.dot(lhs_ref[...].reshape(tb * rows, e), w_ref[...],
                    preferred_element_type=jnp.float32) + b_ref[...]
    out_ref[...] = out2d.reshape(tb, rows, nout).astype(out_ref.dtype)


def pendulum_head(logits, w_mean, b_mean, w_var, b_var, *, n_frames=50, num_steps=2):
    """logits: (B, T, E) with T = 1 + n_frames * patches. Returns dict like PyTorch."""
    B, T, E = logits.shape
    patches = (T - 1) // n_frames
    assert 1 + n_frames * patches == T, "T must be 1 + n_frames * patches"

    n_out_mean = w_mean.shape[0]   # 2
    n_out_var = w_var.shape[0]     # 100  (required for the final view(B, 50, 2))
    assert n_out_mean + n_out_var <= NOUT

    rows = ((n_frames + 1 + 7) // 8) * 8           # 8-row-aligned LHS/output height

    # Batch tiling: num_steps grid steps (>=2 when possible so both v7x cores get
    # work), TB = ceil(B / num_steps) elements per step; pad batch if ragged.
    num_steps = max(1, min(num_steps, B))
    TB = -(-B // num_steps)                         # cdiv
    B_pad = TB * num_steps

    # Glue: split CLS / frame tokens; make frames patch-major so the in-kernel
    # averaging is a reduction over a leading (non-layout) axis.
    cls = logits[:, 0:1, :]                                           # (B, 1, E)
    frames = logits[:, 1:, :].reshape(B, n_frames, patches, E)
    frames = frames.transpose(0, 2, 1, 3)                             # (B, patches, n_frames, E)
    if B_pad != B:
        pad = B_pad - B
        cls = jnp.concatenate([cls, jnp.zeros((pad,) + cls.shape[1:], cls.dtype)], axis=0)
        frames = jnp.concatenate(
            [frames, jnp.zeros((pad,) + frames.shape[1:], frames.dtype)], axis=0)

    # Fused, zero-padded weights/bias -> one lane-dense (E, 128) operand.
    w_fused = jnp.zeros((E, NOUT), jnp.float32)
    w_fused = w_fused.at[:, :n_out_mean].set(jnp.asarray(w_mean, jnp.float32).T)
    w_fused = w_fused.at[:, n_out_mean:n_out_mean + n_out_var].set(
        jnp.asarray(w_var, jnp.float32).T)
    b_fused = jnp.zeros((1, NOUT), jnp.float32)
    b_fused = b_fused.at[0, :n_out_mean].set(jnp.asarray(b_mean, jnp.float32))
    b_fused = b_fused.at[0, n_out_mean:n_out_mean + n_out_var].set(
        jnp.asarray(b_var, jnp.float32))

    out = pl.pallas_call(
        pendulum_head_kernel,
        out_shape=jax.ShapeDtypeStruct((B_pad, rows, NOUT), jnp.float32),
        grid=(num_steps,),
        in_specs=[
            pl.BlockSpec((TB, patches, n_frames, E), lambda b: (b, 0, 0, 0)),  # frames
            pl.BlockSpec((TB, 1, E), lambda b: (b, 0, 0)),                     # cls
            pl.BlockSpec((E, NOUT), lambda b: (0, 0)),                         # fused W
            pl.BlockSpec((1, NOUT), lambda b: (0, 0)),                         # fused b
        ],
        out_specs=pl.BlockSpec((TB, rows, NOUT), lambda b: (b, 0, 0)),
        scratch_shapes=[pltpu.VMEM((TB, rows, E), jnp.float32)],
        compiler_params=pltpu.CompilerParams(
            dimension_semantics=("parallel",)),
    )(frames, cls, w_fused, b_fused)

    out = out[:B]                                                   # drop batch pad
    var = out[:, :n_frames, :n_out_mean]                            # (B, n_frames, 2)
    mean = out[:, n_frames, n_out_mean:n_out_mean + n_out_var]      # (B, 100)
    mean = mean.reshape(B, 50, 2)                                    # PyTorch .view(B, 50, 2)
    # NOTE: PyTorch's .squeeze() on frame_means is a no-op for B > 1; kept as (B, n_frames, 2).
    return {"var": var, "mean": mean}


if __name__ == "__main__":
    B = 2
    emb_dim = 32
    n_frames = 50            # fixed by module semantics (head_var out=100, view(B,50,2))
    patches = 2
    T = 1 + n_frames * patches   # 101 tokens: CLS + 50 frames x 2 patches

    key = jax.random.PRNGKey(0)
    k_x, k_wm, k_bm, k_wv, k_bv = jax.random.split(key, 5)

    logits = jax.random.normal(k_x, (B, T, emb_dim), dtype=jnp.float32)
    # deterministic synthetic parameters (nn.Linear shapes: (out_features, in_features))
    w_mean = 0.1 * jax.random.normal(k_wm, (2, emb_dim), dtype=jnp.float32)
    b_mean = 0.1 * jax.random.normal(k_bm, (2,), dtype=jnp.float32)
    w_var = 0.1 * jax.random.normal(k_wv, (100, emb_dim), dtype=jnp.float32)
    b_var = 0.1 * jax.random.normal(k_bv, (100,), dtype=jnp.float32)

    out = pendulum_head(logits, w_mean, b_mean, w_var, b_var, n_frames=n_frames)
    out = jax.block_until_ready(out)

    # reference (plain JAX, mirrors the PyTorch forward exactly)
    cls_ref = logits[:, 0]
    frames_ref = logits[:, 1:].reshape(B, n_frames, patches, emb_dim)
    frame_means = frames_ref.mean(axis=2)                   # squeeze() is a no-op here
    ref_var = frame_means @ w_mean.T + b_mean               # (B, 50, 2)
    ref_mean = (cls_ref @ w_var.T + b_var).reshape(B, 50, 2)

    assert out["var"].shape == (B, 50, 2) and out["mean"].shape == (B, 50, 2)
    assert jnp.allclose(out["var"], ref_var, atol=1e-4, rtol=1e-4)
    assert jnp.allclose(out["mean"], ref_mean, atol=1e-4, rtol=1e-4)

    print("KERNEL_OK")
</pallas_src>

<mosaic_0001>
module attributes {stable_mosaic.version = 11 : i64} {
  func.func @pendulum_head_kernel(%arg0: i32, %arg1: memref<1x2x50x32xf32, #tpu.memory_space<vmem>>, %arg2: memref<1x1x32xf32, #tpu.memory_space<vmem>>, %arg3: memref<32x128xf32, #tpu.memory_space<vmem>>, %arg4: memref<1x128xf32, #tpu.memory_space<vmem>>, %arg5: memref<1x56x128xf32, #tpu.memory_space<vmem>>, %arg6: memref<1x56x32xf32, #tpu.memory_space<vmem>>) attributes {dimension_semantics = [#tpu.dimension_semantics<parallel>], iteration_bounds = array<i64: 2>, scalar_prefetch = 0 : i64, scratch_operands = 1 : i64, tpu.core_type = #tpu.core_type<tc>, window_params = [{transform_indices = @transform_0, window_bounds = array<i64: 1, 2, 50, 32>}, {transform_indices = @transform_1, window_bounds = array<i64: 1, 1, 32>}, {pipeline_mode = #tpu.pipeline_mode<synchronous>, transform_indices = @transform_2, window_bounds = array<i64: 32, 128>}, {pipeline_mode = #tpu.pipeline_mode<synchronous>, transform_indices = @transform_3, window_bounds = array<i64: 1, 128>}, {transform_indices = @transform_4, window_bounds = array<i64: 1, 56, 128>}]} {
    %c0 = arith.constant 0 : index
    %c0_0 = arith.constant 0 : index
    %c0_1 = arith.constant 0 : index
    %c0_2 = arith.constant 0 : index
    %0 = vector.load %arg1[%c0, %c0_0, %c0_1, %c0_2] : memref<1x2x50x32xf32, #tpu.memory_space<vmem>>, vector<1x2x50x32xf32>
    %cst = arith.constant dense<0.000000e+00> : vector<1x50x32xf32>
    %1 = vector.multi_reduction <add>, %0, %cst [1] : vector<1x2x50x32xf32> to vector<1x50x32xf32>
    %cst_3 = arith.constant 5.000000e-01 : f32
    %2 = vector.broadcast %cst_3 : f32 to vector<1x50x32xf32>
    %3 = arith.mulf %1, %2 : vector<1x50x32xf32>
    %c0_4 = arith.constant 0 : index
    %c0_5 = arith.constant 0 : index
    %c0_6 = arith.constant 0 : index
    %4 = vector.load %arg6[%c0_4, %c0_5, %c0_6] : memref<1x56x32xf32, #tpu.memory_space<vmem>>, vector<1x50x32xf32>
    tpu.vector_store %arg6[%c0_4, %c0_5, %c0_6], %3 {strides = array<i32>} : memref<1x56x32xf32, #tpu.memory_space<vmem>>, vector<1x50x32xf32>,
    %c0_7 = arith.constant 0 : index
    %c0_8 = arith.constant 0 : index
    %c0_9 = arith.constant 0 : index
    %5 = vector.load %arg2[%c0_7, %c0_8, %c0_9] : memref<1x1x32xf32, #tpu.memory_space<vmem>>, vector<1x1x32xf32>
    %c0_10 = arith.constant 0 : index
    %c50 = arith.constant 50 : index
    %c0_11 = arith.constant 0 : index
    %6 = vector.load %arg6[%c0_10, %c50, %c0_11] : memref<1x56x32xf32, #tpu.memory_space<vmem>>, vector<1x1x32xf32>
    tpu.vector_store %arg6[%c0_10, %c50, %c0_11], %5 {strides = array<i32>} : memref<1x56x32xf32, #tpu.memory_space<vmem>>, vector<1x1x32xf32>,
    %cst_12 = arith.constant 0.000000e+00 : f32
    %7 = vector.broadcast %cst_12 : f32 to vector<1x5x32xf32>
    %c0_13 = arith.constant 0 : index
    %c51 = arith.constant 51 : index
    %c0_14 = arith.constant 0 : index
    %8 = vector.load %arg6[%c0_13, %c51, %c0_14] : memref<1x56x32xf32, #tpu.memory_space<vmem>>, vector<1x5x32xf32>
    tpu.vector_store %arg6[%c0_13, %c51, %c0_14], %7 {strides = array<i32>} : memref<1x56x32xf32, #tpu.memory_space<vmem>>, vector<1x5x32xf32>,
    %c0_15 = arith.constant 0 : index
    %c0_16 = arith.constant 0 : index
    %c0_17 = arith.constant 0 : index
    %9 = vector.load %arg6[%c0_15, %c0_16, %c0_17] : memref<1x56x32xf32, #tpu.memory_space<vmem>>, vector<1x56x32xf32>
    %10 = vector.shape_cast %9 : vector<1x56x32xf32> to vector<56x32xf32>
    %c0_18 = arith.constant 0 : index
    %c0_19 = arith.constant 0 : index
    %11 = vector.load %arg3[%c0_18, %c0_19] : memref<32x128xf32, #tpu.memory_space<vmem>>, vector<32x128xf32>
    %cst_20 = arith.constant dense<0.000000e+00> : vector<56x128xf32>
    %12 = tpu.matmul %10, %11, %cst_20 {dimension_numbers = #tpu.dot_dimension_numbers<[1], [0], [0], [1], [0, 0, 1, 1], [], []>} : vector<56x32xf32>, vector<32x128xf32>, vector<56x128xf32> -> vector<56x128xf32>
    %c0_21 = arith.constant 0 : index
    %c0_22 = arith.constant 0 : index
    %13 = vector.load %arg4[%c0_21, %c0_22] : memref<1x128xf32, #tpu.memory_space<vmem>>, vector<1x128xf32>
    %14 = vector.broadcast %13 : vector<1x128xf32> to vector<56x128xf32>
    %15 = arith.addf %12, %14 : vector<56x128xf32>
    %16 = vector.shape_cast %15 : vector<56x128xf32> to vector<1x56x128xf32>
    %c0_23 = arith.constant 0 : index
    %c0_24 = arith.constant 0 : index
    %c0_25 = arith.constant 0 : index
    %17 = vector.load %arg5[%c0_23, %c0_24, %c0_25] : memref<1x56x128xf32, #tpu.memory_space<vmem>>, vector<1x56x128xf32>
    tpu.vector_store %arg5[%c0_23, %c0_24, %c0_25], %16 {strides = array<i32>} : memref<1x56x128xf32, #tpu.memory_space<vmem>>, vector<1x56x128xf32>,
    return
  }
  func.func @transform_0(%arg0: i32) -> (i32, i32, i32, i32) {
    %c0_i32 = arith.constant 0 : i32
    %c0_i32_0 = arith.constant 0 : i32
    %c0_i32_1 = arith.constant 0 : i32
    %c0_i32_2 = arith.constant 0 : i32
    return %arg0, %c0_i32, %c0_i32_0, %c0_i32_1 : i32, i32, i32, i32
  }
  func.func @transform_1(%arg0: i32) -> (i32, i32, i32) {
    %c0_i32 = arith.constant 0 : i32
    %c0_i32_0 = arith.constant 0 : i32
    %c0_i32_1 = arith.constant 0 : i32
    return %arg0, %c0_i32, %c0_i32_0 : i32, i32, i32
  }
  func.func @transform_2(%arg0: i32) -> (i32, i32) {
    %c0_i32 = arith.constant 0 : i32
    %c0_i32_0 = arith.constant 0 : i32
    %c0_i32_1 = arith.constant 0 : i32
    return %c0_i32, %c0_i32_0 : i32, i32
  }
  func.func @transform_3(%arg0: i32) -> (i32, i32) {
    %c0_i32 = arith.constant 0 : i32
    %c0_i32_0 = arith.constant 0 : i32
    %c0_i32_1 = arith.constant 0 : i32
    return %c0_i32, %c0_i32_0 : i32, i32
  }
  func.func @transform_4(%arg0: i32) -> (i32, i32, i32) {
    %c0_i32 = arith.constant 0 : i32
    %c0_i32_0 = arith.constant 0 : i32
    %c0_i32_1 = arith.constant 0 : i32
    return %arg0, %c0_i32, %c0_i32_0 : i32, i32, i32
  }
}

</mosaic_0001>

<bundles_post_ra>
// kernel: tpu_custom_call.1
= control target key start
LH: loop header
LB: loop body
LE: loop exit
PB: predicated region body
PF: predicated region fallthrough
CT: control target
= control target key end

     0   :  { %9 = vsyncpa [#allocation4], 0  ;;  %s890_s0 = inlined_call_operand.vmem [shape: f32[2,2,50,32], index: 0, kind: input, shape index: {}]   ;;  %s891_s1 = inlined_call_operand.vmem [shape: f32[2,1,32], index: 1, kind: input, shape index: {}]   ;;  %s892_s2 = inlined_call_operand.vmem [shape: f32[32,128], index: 2, kind: input, shape index: {}]   ;;  %s893_s3 = inlined_call_operand.vmem [shape: f32[1,128], index: 3, kind: input, shape index: {}]   ;;  %s894_s4 = inlined_call_operand.hbm [shape: f32[2,56,128], index: 4, kind: output, shape index: {}]  }
   0x1   :  { %11 = vsyncpa [#allocation4 + $0x1], 0  ;;  %s699_s15 = smov 0   ;;  %s701_s16 = smov 0  }
   0x2   :  { %s703_s17 = smov 0   ;;  %s705_s18 = smov 0  }
   0x3 LB: > { %s720_s19 = sadd.s32 4294967295, %s667_s18   ;;  %s497_s20 = sadd.s32 4294967294, %s667_s18   ;;  %s667_s18 = sphi %s705_s18, %s900_s18   ;;  %s663_s17 = sphi %s703_s17, %s899_s17   ;;  %s659_s16 = sphi %s701_s16, %s898_s16   ;;  %s655_s15 = sphi %s699_s15, %s897_s15  }
   0x4   : > { %s724_s21 = sadd.s32 1, %s667_s18   ;;  %s118_s22 = sadd.s32 1, %s663_s17 }
   0x5   : > { %s115_s23 = ssub.s32 %s667_s18, %s724_s21  ;;  %p128_p0 = scmp.ne.s32.totalorder %s663_s17, %s659_s16 }
   0x6   : > { %p116_p1 = scmp.eq.s32.totalorder %s115_s23, 0  ;;  %p129_p2 = scmp.eq.s32.totalorder %s720_s19, 1 }
   0x7   : > { %p134_p3 = scmp.ne.s32.totalorder %s659_s16, %s655_s15  ;;  %p135_p4 = scmp.eq.s32.totalorder %s497_s20, 1 }
   0x8   : > { %s735_s24 = scalar_select %p116_p1, %s663_s17, %s118_s22  }
   0x9   : > { %p737_p5 = por %p129_p2, %p128_p0  ;;  %p741_p6 = por %p135_p4, %p134_p3 }
   0xa   : > { %p500_p7 = scmp.ge.s32.totalorder %s667_s18, 1  ;;  %p173_p8 = scmp.lt.s32.totalorder %s667_s18, 3 }
   0xc   : > { %p174_p9 = pnand %p500_p7, %p173_p8 }
   0xd   : > { %p202_p10 = scmp.lt.s32.totalorder (!%p174_p9), %s720_s19, 1  ;;  %s199_s23 = sand.u32 (!%p174_p9), 1, %s659_s16  }
   0xe   : > { %177 = sbr.rel (%p174_p9) target bundleno = 259 (0x103), region = 36 }
   0xf   : > { %s561_s27 = smul.u32 (!%p174_p9), 56, %s199_s23 }
  0x11   : > { %s201_s30 = scalar_lea.vmem (!%p174_p9), [#allocation3], %s561_s27 }
  0x12   : > { %s426_s6 = sshll.u32 (!%p174_p9), %s201_s30, 4  ;;  %s841_s6 = int_to_ptr.vmem [resolvable:$true] %s426_s6 }
  0x13   : > { %v276_v0 = vld [vmem:[%s892_s2 + $0x18] sm:$0xff]  ;;  %v669_v1 = vmov 0.0   ;;  %v275_v2 = vld [vmem:[%s892_s2 + $0x10] sm:$0xff]  ;;  %vm264_vm0 = vcmask 258048   ;;  %s203_s5 = scalar_select %p202_p10, %s720_s19, 1  ;;  %v274_v3 = vld [vmem:[%s892_s2 + $0x8] sm:$0xff] }
  0x14   : > { %524 = vmatprep.subr.mxu0 %v669_v1  ;;  %553 = vmatprep.subr.mxu1 %v669_v1  ;;  %265 = vst.msk [vmem:[#allocation2 + $0x33] sm:$0x1f] %vm264_vm0, %v669_v1  ;;  %vm262_vm1 = vcmask 253952   ;;  %v273_v4 = vld [vmem:[%s892_s2] sm:$0xff]  ;;  %vm224_vm2 = vcmask 261120   ;;  %vm670_vm3 = vmmov 0  }
  0x15   : > { %525 = vmatpush3.msra.mxu0 %v276_v0  ;;  %557 = vmatpush3.msra.mxu1 %v276_v0  ;;  %s562_s8 = smul.u32 112, %s203_s5  ;;  %s209_s11 = scalar_lea.vmem %s891_s1, %s203_s5  ;;  %vm243_vm4 = vcmask 254976   ;;  %v502_v55 = vld [vmem:[%s893_s3] ss:$0 sm:$0xff] }
  0x16   : > { %526 = vmatprep.subr.mxu0 %v669_v1  ;;  %554 = vmatprep.subr.mxu1 %v669_v1  ;;  %v261_v5 = vld [vmem:[%s209_s11] sm:$0x1]  ;;  %s563_s5 = smul.u32 896, %s720_s19  ;;  %s850_s19 = scalar_lea.sflag [#allocation4], %s199_s23 }
  0x17   : > { %527 = vmatpush3.msra.mxu0 %v275_v2  ;;  %558 = vmatpush3.msra.mxu1 %v275_v2  ;;  %s774_s22 = scalar_lea.vmem %s890_s0, %s562_s8  ;;  %263 = vst.msk [vmem:[#allocation2 + $0x32] sm:$0x1] %vm262_vm1, %v261_v5  ;;  %s607_s10 = scalar_lea.vmem %s841_s6, 896 }
  0x18   : > { %528 = vmatprep.subr.mxu0 %v669_v1  ;;  %555 = vmatprep.subr.mxu1 %v669_v1  ;;  %v210_v6 = vld [vmem:[%s774_s22] sm:$0xff]  ;;  %v217_v7 = vld [vmem:[%s774_s22 + $0x38] sm:$0xff]  ;;  %v211_v13 = vld [vmem:[%s774_s22 + $0x8] sm:$0xff]  ;;  %s846_s9 = scalar_lea.hbm %s894_s4, %s563_s5  ;;  %p608_p11 = scmp.ne.s32.totalorder %s841_s6, %s607_s10 }
  0x19   : > { %529 = vmatpush3.msra.mxu0 %v274_v3  ;;  %559 = vmatpush3.msra.mxu1 %v274_v3  ;;  %v214_v8 = vld [vmem:[%s774_s22 + $0x20] sm:$0xff]  ;;  %v225_v9 = vsel %vm224_vm2, %v210_v6, 0.0  ;;  %v226_v10 = vsel %vm224_vm2, %v217_v7, 0.0  ;;  %v221_v11 = vld [vmem:[%s774_s22 + $0x58] sm:$0xff]  ;;  %v228_v17 = vsel %vm224_vm2, %v211_v13, 0.0  ;;  %v215_v19 = vld [vmem:[%s774_s22 + $0x28] sm:$0xff] }
  0x1a   : > { %530 = vmatprep.subr.mxu0 %v669_v1  ;;  %532 = vmatprep.mubr.msk.f32.mxu0 %vm670_vm3, %v669_v1  ;;  %v237_v12 = vsel %vm224_vm2, %v214_v8, 0.0  ;;  %v218_v14 = vld [vmem:[%s774_s22 + $0x40] sm:$0xff]  ;;  %v227_v15 = vadd.f32 %v226_v10, %v225_v9  ;;  %v238_v16 = vsel %vm224_vm2, %v221_v11, 0.0  ;;  %v212_v21 = vld [vmem:[%s774_s22 + $0x10] sm:$0xff]  ;;  %v240_v24 = vsel %vm224_vm2, %v215_v19, 0.0  ;;  %v219_v26 = vld [vmem:[%s774_s22 + $0x48] sm:$0xff]  ;;  %p609_p12 = pnand %p608_p11, %p737_p5 }
  0x1b   : > { %531 = vmatpush3.msra.mxu0 %v273_v4  ;;  %556 = vmatprep.subr.mxu1 %v669_v1  ;;  %v229_v18 = vsel %vm224_vm2, %v218_v14, 0.0  ;;  %v222_v20 = vld [vmem:[%s774_s22 + $0x60] sm:$0xff]  ;;  %v239_v22 = vadd.f32 %v238_v16, %v237_v12  ;;  %v216_v27 = vld [vmem:[%s774_s22 + $0x30] sm:$0x3]  ;;  %v213_v28 = vld [vmem:[%s774_s22 + $0x18] sm:$0xff]  ;;  %v231_v31 = vsel %vm224_vm2, %v212_v21, 0.0 }
  0x1c   : > { %560 = vmatpush3.msra.mxu1 %v273_v4  ;;  %544 = vmatprep.mubr.msk.f32.mxu1 %vm670_vm3, %v669_v1  ;;  %v230_v23 = vadd.f32 %v229_v18, %v228_v17  ;;  %v241_v25 = vsel %vm224_vm2, %v222_v20, 0.0  ;;  %v247_v29 = vmul.f32 0.5, %v227_v15  ;;  %v232_v32 = vsel %vm224_vm2, %v219_v26, 0.0  ;;  %v223_v33 = vld [vmem:[%s774_s22 + $0x68] sm:$0x3]  ;;  %v220_v34 = vld [vmem:[%s774_s22 + $0x50] sm:$0xff]  ;;  %p610_p13 = pneg %p609_p12 }
  0x1d   : > { %v242_v30 = vadd.f32 %v241_v25, %v240_v24  ;;  %v251_v35 = vmul.f32 0.5, %v239_v22  ;;  %v233_v37 = vadd.f32 %v232_v32, %v231_v31  ;;  %v244_v38 = vsel %vm243_vm4, %v216_v27, 0.0  ;;  %s671_s11 = smov [#allocation3]  }
  0x1e   : > { %v248_v36 = vmul.f32 0.5, %v230_v23  ;;  %254 = vst.msk [vmem:[#allocation2] sm:$0xff] %vm224_vm2, %v247_v29  ;;  %v245_v40 = vsel %vm243_vm4, %v223_v33, 0.0  ;;  %v234_v41 = vsel %vm224_vm2, %v213_v28, 0.0  ;;  %v235_v42 = vsel %vm224_vm2, %v220_v34, 0.0  ;;  %s611_s12 = sshll.u32 %s671_s11, 4  ;;  %s612_s12 = int_to_ptr.vmem [resolvable:$false] %s611_s12 }
  0x1f   : > { %v252_v39 = vmul.f32 0.5, %v242_v30  ;;  %258 = vst.msk [vmem:[#allocation2 + $0x20] sm:$0xff] %vm224_vm2, %v251_v35  ;;  %v249_v43 = vmul.f32 0.5, %v233_v37  ;;  %v246_v44 = vadd.f32 %v245_v40, %v244_v38  ;;  %v236_v45 = vadd.f32 %v235_v42, %v234_v41  ;;  %s613_s13 = scalar_lea.vmem %s612_s12, 1792  ;;  %p614_p0 = scmp.lt.s32.totalorder %s841_s6, %s612_s12 }
  0x20   : > { %255 = vst.msk [vmem:[#allocation2 + $0x8] sm:$0xff] %vm224_vm2, %v248_v36  ;;  %p615_p1 = scmp.lt.s32.totalorder %s613_s13, %s607_s10 }
  0x21   : > { %259 = vst.msk [vmem:[#allocation2 + $0x28] sm:$0xff] %vm224_vm2, %v252_v39  ;;  %256 = vst.msk [vmem:[#allocation2 + $0x10] sm:$0xff] %vm224_vm2, %v249_v43  ;;  %v253_v46 = vmul.f32 0.5, %v246_v44  ;;  %v250_v47 = vmul.f32 0.5, %v236_v45 }
  0x22   : > { %p616_p2 = por %p615_p1, %p614_p0 }
  0x23   : > { %260 = vst.msk [vmem:[#allocation2 + $0x30] sm:$0x3] %vm243_vm4, %v253_v46 }
  0x24   : > { %257 = vst.msk [vmem:[#allocation2 + $0x18] sm:$0xff] %vm224_vm2, %v250_v47  ;;  %p617_p3 = pnand %p616_p2, %p610_p13 }
  0x25   : > { %v266_v48 = vld [vmem:[#allocation2] sm:$0xff] }
  0x26   : > { %533 = vmatmul.mubr.msk.f32.vlgmr.msra.gmra.mxu0 %vm224_vm2, %v266_v48  ;;  %v270_v49 = vld [vmem:[#allocation2 + $0x20] sm:$0xff] }
  0x27   : > { %545 = vmatmul.mubr.msk.f32.vlgmr.msra.gmra.mxu1 %vm224_vm2, %v270_v49  ;;  %535 = vmatprep.mubr.msk.f32.mxu0 %vm670_vm3, %v669_v1  ;;  %v267_v50 = vld [vmem:[#allocation2 + $0x8] sm:$0xff] }
  0x28   : > { %547 = vmatprep.mubr.msk.f32.mxu1 %vm670_vm3, %v669_v1  ;;  %v271_v51 = vld [vmem:[#allocation2 + $0x28] sm:$0xff]  ;;  %v268_v52 = vld [vmem:[#allocation2 + $0x10] sm:$0xff] }
  0x2a   : > { %536 = vmatmul.mubr.msk.f32.gmra.mxu0 %vm224_vm2, %v267_v50  ;;  %v272_v53 = vld [vmem:[#allocation2 + $0x30] sm:$0xff] }
  0x2b   : > { %548 = vmatmul.mubr.msk.f32.gmra.mxu1 %vm224_vm2, %v271_v51  ;;  %538 = vmatprep.mubr.msk.f32.mxu0 %vm670_vm3, %v669_v1  ;;  %v269_v54 = vld [vmem:[#allocation2 + $0x18] sm:$0xff] }
  0x2c   : > { %550 = vmatprep.mubr.msk.f32.mxu1 %vm670_vm3, %v669_v1 }
  0x2e   : > { %539 = vmatmul.mubr.msk.f32.gmra.mxu0 %vm224_vm2, %v268_v52 }
  0x2f   : > { %551 = vmatmul.mubr.msk.f32.gmra.mxu1 %vm224_vm2, %v272_v53  ;;  %541 = vmatprep.mubr.msk.f32.mxu0 %vm670_vm3, %v669_v1 }
  0x32   : > { %542 = vmatmul.mubr.msk.f32.gmra.mxu0 %vm224_vm2, %v269_v54 }
  0xe6   : > { %v371_v56 = vpop.f32.mrf.mxu0 }
  0xe7   : > { %v372_v57 = vadd.f32 %v502_v55, %v371_v56  ;;  %v391_v58 = vpop.f32.mrf.mxu1 }
  0xe8   : > { %v534_v59 = vpop.f32.mrf.mxu0  ;;  %v392_v60 = vadd.f32 %v502_v55, %v391_v58 }
  0xe9   : > { %405 = vst [vmem:[%s201_s30] sm:$0xff] %v372_v57  ;;  %v546_v61 = vpop.f32.mrf.mxu1 }
  0xea   : > { %409 = vst [vmem:[%s201_s30 + $0x20] sm:$0xff] %v392_v60  ;;  %v376_v62 = vpop.f32.mrf.mxu0 }
  0xeb   : > { %v377_v63 = vadd.f32 %v502_v55, %v376_v62  ;;  %v396_v0 = vpop.f32.mrf.mxu1 }
  0xec   : > { %v537_v1 = vpop.f32.mrf.mxu0  ;;  %v397_v2 = vadd.f32 %v502_v55, %v396_v0 }
  0xed   : > { %406 = vst [vmem:[%s201_s30 + $0x8] sm:$0xff] %v377_v63  ;;  %v549_v3 = vpop.f32.mrf.mxu1 }
  0xee   : > { %410 = vst [vmem:[%s201_s30 + $0x28] sm:$0xff] %v397_v2  ;;  %v381_v4 = vpop.f32.mrf.mxu0 }
  0xef   : > { %v382_v5 = vadd.f32 %v502_v55, %v381_v4  ;;  %v401_v6 = vpop.f32.mrf.mxu1 }
  0xf0   : > { %v540_v7 = vpop.f32.mrf.mxu0  ;;  %v402_v8 = vadd.f32 %v502_v55, %v401_v6 }
  0xf1   : > { %407 = vst [vmem:[%s201_s30 + $0x10] sm:$0xff] %v382_v5  ;;  %v552_v9 = vpop.f32.mrf.mxu1 }
  0xf2   : > { %411 = vst [vmem:[%s201_s30 + $0x30] sm:$0xff] %v402_v8  ;;  %v386_v10 = vpop.f32.mrf.mxu0 }
  0xf3   : > { %v387_v11 = vadd.f32 %v502_v55, %v386_v10 }
  0xf4   : > { %v543_v12 = vpop.f32.mrf.mxu0 }
  0xf5   : > { %408 = vst [vmem:[%s201_s30 + $0x18] sm:$0xff] %v387_v11 }
  0xf6   : > { %620 = shalt.err (!%p617_p3)
}
  0xf7   : > { %s621_s14 = scalar_lea.hbm %s846_s9, 896  ;;  %s625_s23 = scalar_lea.hbm %s894_s4, 1792 }
  0xf8   : > { %p622_p4 = scmp.ne.s32.totalorder %s846_s9, %s621_s14  ;;  %p626_p9 = scmp.lt.s32.totalorder %s846_s9, %s894_s4 }
  0xf9   : > { %p627_p10 = scmp.lt.s32.totalorder %s625_s23, %s621_s14 }
  0xfa   : > { %p623_p7 = pnand %p622_p4, %p737_p5 }
  0xfb   : > { %p628_p11 = por %p627_p10, %p626_p9 }
  0xfc   : > { %p624_p8 = pneg %p623_p7 }
  0xfe   : > { %p629_p12 = pnand %p628_p11, %p624_p8 }
 0x100   : > { %632 = shalt.err (!%p629_p12)
}
 0x101   : > { %s672_s29 = smov 128   ;;  %s673_s30 = smov 8  }
 0x102   : > { %564 = dma.vmem_to_hbm [thread:$0]  (%p737_p5), %s841_s6, 896, %s846_s9, %s850_s19, %s672_s29, %s672_s29, %s673_s30  }
 0x103 PF: > { %p570_p13 = scmp.ge.s32.totalorder %s667_s18, 2  ;;  %s441_s5 = sand.u32 1, %s655_s15  }
 0x104   : > { %s442_s7 = scalar_lea.sflag [#allocation4], %s441_s5 }
 0x105   : > { %p567_p0 = pnand %p570_p13, %p741_p6 }
 0x107   : > { %p568_p1 = pneg %p567_p0 }
 0x109   : > { %650 = dma.done.wait (%p568_p1), %s442_s7, 896  }
 0x10a   : > { %652 = vsyncadd (%p568_p1), %s442_s7, 4294966400  ;;  %p14_p2 = scmp.ge.s32.totalorder %s724_s21, 4   ;;  %s897_s15 = smov %s659_s16 }
 0x10b   : > { %s898_s16 = smov %s663_s17  ;;  %s899_s17 = smov %s735_s24 }
 0x10c   : > { %s900_s18 = smov %s724_s21  ;;  %16 = sbr.rel (!%p14_p2) target bundleno = 3 (0x3), region = 74 }
 0x111   :  { %447 = vsyncpa [#allocation4], 1 }
 0x112   :  { %449 = vsyncpa [#allocation4 + $0x1], 1 }

</bundles_post_ra>
